<compile_context>
chip_gen: v7x
topology: tpu7x:2x2x1
jax: 0.10.0
libtpu: 0.0.40
codegen_flags: <defaults>
</compile_context>

<pallas_src>
import functools

import jax
import jax.numpy as jnp
from jax.experimental import pallas as pl
from jax.experimental.pallas import tpu as pltpu

KERNEL_SIZE = 13             # moving-average window (fixed in the PyTorch module)
PAD = (KERNEL_SIZE - 1) // 2
LANES = 128
MAX_TILE_N = 1024            # lanes per grid step (multiple of 128)


def _model_kernel(x_ref, w1_ref, b1_ref, w2_ref, b2_ref, out_ref):
    """One lane-tile of the conv head.

    x_ref:   (L, TN)      bf16   streamed activations (batch*feature on lanes)
    w1_ref:  (L, L)       bf16   out_linear1 weight (1x1 conv over channels=L)
    b1_ref:  (L, 1)       f32    out_linear1 bias
    w2_ref:  (Lout, L)    bf16   out_linear2 weight
    b2_ref:  (Lout, 1)    f32    out_linear2 bias
    out_ref: (Lout, TN)   input dtype
    """
    # out_linear1: MXU matmul (bf16 operands, f32 accumulate) + VPU bias + ReLU.
    h = jnp.dot(w1_ref[...], x_ref[...], preferred_element_type=jnp.float32)
    h = jnp.maximum(h + b1_ref[...], 0.0)
    # out_linear2.
    out = jnp.dot(w2_ref[...], h.astype(w2_ref.dtype),
                  preferred_element_type=jnp.float32)
    out_ref[...] = (out + b2_ref[...]).astype(out_ref.dtype)


def prepare_params(w1, b1, w2, b2):
    """One-time parameter preparation (hoisted out of the per-call forward)."""
    w1p = jnp.asarray(w1, jnp.bfloat16)                 # (L, L)
    b1p = jnp.asarray(b1, jnp.float32).reshape(-1, 1)   # (L, 1)
    w2p = jnp.asarray(w2, jnp.bfloat16)                 # (Lout, L)
    b2p = jnp.asarray(b2, jnp.float32).reshape(-1, 1)   # (Lout, 1)
    return w1p, b1p, w2p, b2p


@functools.partial(jax.jit, static_argnames=("label_len",))
def model_forward(data_ts, w1p, b1p, w2p, b2p, *, label_len):
    """data_ts: [B, L, D]. Returns [B, label_len, D] in data_ts.dtype."""
    B, L, D = data_ts.shape
    N = B * D

    # Lane-tile width: multiple of 128, capped so each block pair stays small
    # and the grid pipelines (and shards across v7x's two TensorCores).
    TN = min(MAX_TILE_N, ((N + LANES - 1) // LANES) * LANES)
    Npad = ((N + TN - 1) // TN) * TN
    num_tiles = Npad // TN

    # ts_layers == 0  =>  seasonal + trend reconstructs data_ts exactly, so the
    # moving-average / padding path is skipped and data_ts goes straight in.
    # Transpose so batch*feature is lane-dense (needed because D < 128 here).
    x2d = jnp.transpose(data_ts, (1, 0, 2)).reshape(L, N).astype(jnp.bfloat16)
    if Npad != N:
        x2d = jnp.pad(x2d, ((0, 0), (0, Npad - N)))

    out_dtype = data_ts.dtype
    flops = 2 * (L * L + label_len * L) * Npad
    bytes_accessed = (
        x2d.size * x2d.dtype.itemsize
        + w1p.size * w1p.dtype.itemsize + b1p.size * b1p.dtype.itemsize
        + w2p.size * w2p.dtype.itemsize + b2p.size * b2p.dtype.itemsize
        + label_len * Npad * jnp.dtype(out_dtype).itemsize
    )
    cost = pl.CostEstimate(flops=flops, transcendentals=0,
                           bytes_accessed=bytes_accessed)

    grid_spec = pltpu.PrefetchScalarGridSpec(
        num_scalar_prefetch=0,
        grid=(num_tiles,),
        in_specs=[
            pl.BlockSpec((L, TN), lambda n: (0, n)),           # x tile (streamed)
            pl.BlockSpec((L, L), lambda n: (0, 0)),            # w1 (DMA'd once)
            pl.BlockSpec((L, 1), lambda n: (0, 0)),            # b1
            pl.BlockSpec((label_len, L), lambda n: (0, 0)),    # w2
            pl.BlockSpec((label_len, 1), lambda n: (0, 0)),    # b2
        ],
        out_specs=pl.BlockSpec((label_len, TN), lambda n: (0, n)),
    )

    out2d = pl.pallas_call(
        _model_kernel,
        out_shape=jax.ShapeDtypeStruct((label_len, Npad), out_dtype),
        grid_spec=grid_spec,
        compiler_params=pltpu.CompilerParams(
            dimension_semantics=("parallel",)),
        cost_estimate=cost,
    )(x2d, w1p, b1p, w2p, b2p)

    out = out2d[:, :N].reshape(label_len, B, D)
    return jnp.transpose(out, (1, 0, 2))                        # [B, label_len, D]


def reference_forward(data_ts, w1, b1, w2, b2):
    """Pure-JAX f32 reference mirroring the PyTorch forward literally (ts_layers = 0)."""
    B, L, D = data_ts.shape
    front = jnp.repeat(data_ts[:, 0:1, :], PAD, axis=1)
    end = jnp.repeat(data_ts[:, -1:, :], PAD, axis=1)
    xpad = jnp.concatenate([front, data_ts, end], axis=1)       # [B, Lp, D]
    windows = jnp.stack([xpad[:, k:k + L, :] for k in range(KERNEL_SIZE)], axis=0)
    moving_mean = jnp.mean(windows, axis=0)
    seasonal = data_ts - moving_mean
    ts_out = seasonal + moving_mean
    h = jnp.einsum("ol,bld->bod", w1, ts_out) + b1[None, :, None]
    h = jnp.maximum(h, 0.0)
    out = jnp.einsum("ol,bld->bod", w2, h) + b2[None, :, None]
    return out


def reference_forward_bf16(data_ts, w1p, b1p, w2p, b2p):
    """Reference with the same bf16 operand casts as the kernel (f32 accumulate)."""
    x = data_ts.astype(jnp.bfloat16)
    h = jnp.einsum("ol,bld->bod", w1p, x,
                   preferred_element_type=jnp.float32) + b1p[None, :, :1]
    h = jnp.maximum(h, 0.0)
    out = jnp.einsum("ol,bld->bod", w2p, h.astype(jnp.bfloat16),
                     preferred_element_type=jnp.float32) + b2p[None, :, :1]
    return out


if __name__ == "__main__":
    # Small shapes consistent with the module's config.
    B = 2          # batch
    L = 16         # configs.seq_len
    Lout = 8       # configs.label_len
    D = 32         # feature width (Conv1d "spatial" axis)

    key = jax.random.PRNGKey(0)
    k_ts, k_rs, k_w1, k_b1, k_w2, k_b2 = jax.random.split(key, 6)

    data_ts = jax.random.normal(k_ts, (B, L, D), dtype=jnp.float32)
    data_rs = jax.random.normal(k_rs, (B, L, D), dtype=jnp.float32)  # unused by forward

    # Conv1d kernel_size=1 -> weights squeeze to (out, in).
    w1 = 0.1 * jax.random.normal(k_w1, (L, L), dtype=jnp.float32)
    b1 = 0.1 * jax.random.normal(k_b1, (L,), dtype=jnp.float32)
    w2 = 0.1 * jax.random.normal(k_w2, (Lout, L), dtype=jnp.float32)
    b2 = 0.1 * jax.random.normal(k_b2, (Lout,), dtype=jnp.float32)

    # One-time parameter prep (hoisted out of the per-call path).
    w1p, b1p, w2p, b2p = prepare_params(w1, b1, w2, b2)

    out = model_forward(data_ts, w1p, b1p, w2p, b2p, label_len=Lout)
    out = jax.block_until_ready(out)
    assert out.shape == (B, Lout, D), out.shape

    # Tight check against a reference that uses the same bf16 operand casts.
    ref_bf16 = reference_forward_bf16(data_ts, w1p, b1p, w2p, b2p)
    assert jnp.allclose(out, ref_bf16, atol=1e-3, rtol=1e-3), \
        float(jnp.max(jnp.abs(out - ref_bf16)))

    # Loose check against the literal f32 reference (bf16 operands => ~1e-3 abs err).
    ref = reference_forward(data_ts, w1, b1, w2, b2)
    assert jnp.allclose(out, ref, atol=2e-2, rtol=2e-2), \
        float(jnp.max(jnp.abs(out - ref)))

    print("KERNEL_OK")
</pallas_src>

<mosaic_0001>
module attributes {stable_mosaic.version = 11 : i64} {
  func.func @_model_kernel(%arg0: i32, %arg1: memref<16x128xbf16, #tpu.memory_space<vmem>>, %arg2: memref<16x16xbf16, #tpu.memory_space<vmem>>, %arg3: memref<16x1xf32, #tpu.memory_space<vmem>>, %arg4: memref<8x16xbf16, #tpu.memory_space<vmem>>, %arg5: memref<8x1xf32, #tpu.memory_space<vmem>>, %arg6: memref<8x128xf32, #tpu.memory_space<vmem>>) attributes {dimension_semantics = [#tpu.dimension_semantics<parallel>], iteration_bounds = array<i64: 1>, scalar_prefetch = 0 : i64, scratch_operands = 0 : i64, tpu.core_type = #tpu.core_type<tc>, window_params = [{transform_indices = @transform_0, window_bounds = array<i64: 16, 128>}, {pipeline_mode = #tpu.pipeline_mode<synchronous>, transform_indices = @transform_1, window_bounds = array<i64: 16, 16>}, {pipeline_mode = #tpu.pipeline_mode<synchronous>, transform_indices = @transform_2, window_bounds = array<i64: 16, 1>}, {pipeline_mode = #tpu.pipeline_mode<synchronous>, transform_indices = @transform_3, window_bounds = array<i64: 8, 16>}, {pipeline_mode = #tpu.pipeline_mode<synchronous>, transform_indices = @transform_4, window_bounds = array<i64: 8, 1>}, {transform_indices = @transform_5, window_bounds = array<i64: 8, 128>}]} {
    %c0 = arith.constant 0 : index
    %c0_0 = arith.constant 0 : index
    %0 = vector.load %arg2[%c0, %c0_0] : memref<16x16xbf16, #tpu.memory_space<vmem>>, vector<16x16xbf16>
    %c0_1 = arith.constant 0 : index
    %c0_2 = arith.constant 0 : index
    %1 = vector.load %arg1[%c0_1, %c0_2] : memref<16x128xbf16, #tpu.memory_space<vmem>>, vector<16x128xbf16>
    %cst = arith.constant dense<0.000000e+00> : vector<16x128xf32>
    %2 = tpu.matmul %0, %1, %cst {dimension_numbers = #tpu.dot_dimension_numbers<[1], [0], [0], [1], [0, 0, 1, 1], [], []>} : vector<16x16xbf16>, vector<16x128xbf16>, vector<16x128xf32> -> vector<16x128xf32>
    %c0_3 = arith.constant 0 : index
    %c0_4 = arith.constant 0 : index
    %3 = vector.load %arg3[%c0_3, %c0_4] : memref<16x1xf32, #tpu.memory_space<vmem>>, vector<16x1xf32>
    %4 = vector.broadcast %3 : vector<16x1xf32> to vector<16x128xf32>
    %5 = arith.addf %2, %4 : vector<16x128xf32>
    %cst_5 = arith.constant 0.000000e+00 : f32
    %6 = vector.broadcast %cst_5 : f32 to vector<16x128xf32>
    %7 = arith.maximumf %5, %6 : vector<16x128xf32>
    %c0_6 = arith.constant 0 : index
    %c0_7 = arith.constant 0 : index
    %8 = vector.load %arg4[%c0_6, %c0_7] : memref<8x16xbf16, #tpu.memory_space<vmem>>, vector<8x16xbf16>
    %9 = arith.truncf %7 : vector<16x128xf32> to vector<16x128xbf16>
    %cst_8 = arith.constant dense<0.000000e+00> : vector<8x128xf32>
    %10 = tpu.matmul %8, %9, %cst_8 {dimension_numbers = #tpu.dot_dimension_numbers<[1], [0], [0], [1], [0, 0, 1, 1], [], []>} : vector<8x16xbf16>, vector<16x128xbf16>, vector<8x128xf32> -> vector<8x128xf32>
    %c0_9 = arith.constant 0 : index
    %c0_10 = arith.constant 0 : index
    %11 = vector.load %arg5[%c0_9, %c0_10] : memref<8x1xf32, #tpu.memory_space<vmem>>, vector<8x1xf32>
    %12 = vector.broadcast %11 : vector<8x1xf32> to vector<8x128xf32>
    %13 = arith.addf %10, %12 : vector<8x128xf32>
    %c0_11 = arith.constant 0 : index
    %c0_12 = arith.constant 0 : index
    %14 = vector.load %arg6[%c0_11, %c0_12] : memref<8x128xf32, #tpu.memory_space<vmem>>, vector<8x128xf32>
    tpu.vector_store %arg6[%c0_11, %c0_12], %13 {strides = array<i32>} : memref<8x128xf32, #tpu.memory_space<vmem>>, vector<8x128xf32>,
    return
  }
  func.func @transform_0(%arg0: i32) -> (i32, i32) {
    %c0_i32 = arith.constant 0 : i32
    %c0_i32_0 = arith.constant 0 : i32
    return %c0_i32, %arg0 : i32, i32
  }
  func.func @transform_1(%arg0: i32) -> (i32, i32) {
    %c0_i32 = arith.constant 0 : i32
    %c0_i32_0 = arith.constant 0 : i32
    %c0_i32_1 = arith.constant 0 : i32
    return %c0_i32, %c0_i32_0 : i32, i32
  }
  func.func @transform_2(%arg0: i32) -> (i32, i32) {
    %c0_i32 = arith.constant 0 : i32
    %c0_i32_0 = arith.constant 0 : i32
    %c0_i32_1 = arith.constant 0 : i32
    return %c0_i32, %c0_i32_0 : i32, i32
  }
  func.func @transform_3(%arg0: i32) -> (i32, i32) {
    %c0_i32 = arith.constant 0 : i32
    %c0_i32_0 = arith.constant 0 : i32
    %c0_i32_1 = arith.constant 0 : i32
    return %c0_i32, %c0_i32_0 : i32, i32
  }
  func.func @transform_4(%arg0: i32) -> (i32, i32) {
    %c0_i32 = arith.constant 0 : i32
    %c0_i32_0 = arith.constant 0 : i32
    %c0_i32_1 = arith.constant 0 : i32
    return %c0_i32, %c0_i32_0 : i32, i32
  }
  func.func @transform_5(%arg0: i32) -> (i32, i32) {
    %c0_i32 = arith.constant 0 : i32
    %c0_i32_0 = arith.constant 0 : i32
    return %c0_i32, %arg0 : i32, i32
  }
}

</mosaic_0001>

<bundles_post_ra>
// kernel: model_forward.1
= control target key start
LH: loop header
LB: loop body
LE: loop exit
PB: predicated region body
PF: predicated region fallthrough
CT: control target
= control target key end

     0   :  { %v178_v0 = vmov 0.0   ;;  %vm179_vm0 = vmmov 0   ;;  %v180_v3 = vmov 0   ;;  %vm48_vm1 = vcmask 130048   ;;  %s234_s0 = inlined_call_operand.vmem [shape: bf16[16,128], index: 0, kind: input, shape index: {}]   ;;  %s235_s1 = inlined_call_operand.vmem [shape: bf16[16,16], index: 1, kind: input, shape index: {}]   ;;  %s236_s2 = inlined_call_operand.vmem [shape: f32[16,1], index: 2, kind: input, shape index: {}]   ;;  %s237_s4 = inlined_call_operand.vmem [shape: f32[8,1], index: 4, kind: input, shape index: {}]   ;;  %s238_s3 = inlined_call_operand.vmem [shape: bf16[8,16], index: 3, kind: input, shape index: {}]   ;;  %s239_s5 = inlined_call_operand.vmem [shape: f32[8,128], index: 5, kind: output, shape index: {}]  }
   0x1   :  { %159 = vmatprep.subr.bf16.mxu0 %v178_v0  ;;  %v176_v1 = vld [vmem:[%s234_s0] sm:$0xff]   ;;  %161 = vmatprep.mubr.msk.bf16.mxu0 %vm179_vm0, %v178_v0  ;;  %v26_v5 = vld [vmem:[%s236_s2 + $0x8] sm:$0xff] }
   0x2   :  { %v177_v2 = vld [vmem:[%s235_s1] sm:$0xff]   ;;  %174 = vset.pattern.permute.xlu0 %v180_v3  ;;  %165 = vmatprep.subr.bf16.mxu1 %v178_v0 }
   0x3   :  { %160 = vmatpush3.bf16.msra.mxu0 %v176_v1  ;;  %v25_v4 = vld [vmem:[%s236_s2] sm:$0xff]  ;;  %167 = vmatprep.mubr.msk.bf16.mxu1 %vm179_vm0, %v178_v0 }
   0x4   :  { %29 = vperm.xlu0 %174, %v25_v4   ;;  %175 = vset.pattern.permute.xlu1 %v180_v3  ;;  %v97_v6 = vld [vmem:[%s237_s4] sm:$0xff] }
   0x5   :  { %100 = vperm.xlu1 %175, %v97_v6   ;;  %v95_v18 = vld [vmem:[%s238_s3] sm:$0xf] }
   0x6   :  { %162 = vmatmul.mubr.msk.bf16.vlgmr.msra.gmra.mrb[0].mxu0 %vm48_vm1, %v177_v2 }
   0x8   :  { %34 = vperm.xlu0 %174, %v26_v5  }
  0x83   :  { %v30_v7 = vpop.permute.xlu0 %29 }
  0x84   :  { %v101_v19 = vpop.permute.xlu1 %100 }
  0x87   :  { %v35_v11 = vpop.permute.xlu0 %34 }
  0xd9   :  { %v86_v8 = vpop.f32.mrb[0].mxu0 }
  0xda   :  { %v87_v9 = vadd.f32 %v86_v8, %v30_v7  ;;  %v163_v10 = vpop.f32.mrb[1].mxu0 }
  0xdb   :  { %v89_v12 = vpop.f32.mrb[2].mxu0 }
  0xdc   :  { %v90_v13 = vadd.f32 %v89_v12, %v35_v11  ;;  %v164_v14 = vpop.f32.mrb[3].mxu0  ;;  %v93_v15 = vmax.f32 %v87_v9, 0.0 }
  0xde   :  { %v94_v16 = vmax.f32 %v90_v13, 0.0 }
  0xe0   :  { %v96_v17 = vpack.c.bf16 %v94_v16, %v93_v15 }
  0xe2   :  { %166 = vmatpush3.bf16.msra.mxu1 %v96_v17 }
  0xe5   :  { %168 = vmatmul.mubr.msk.bf16.vlgmr.msra.gmra.mrb[0].mxu1 %vm48_vm1, %v95_v18 }
 0x1b8   :  { %v140_v20 = vpop.f32.mrb[0].mxu1 }
 0x1b9   :  { %v141_v21 = vadd.f32 %v140_v20, %v101_v19  ;;  %v169_v22 = vpop.f32.mrb[1].mxu1 }
 0x1ba   :  { %v143_v23 = vpop.f32.mrb[2].mxu1 }
 0x1bb   :  { %146 = vst [vmem:[%s239_s5] sm:$0xff] %v141_v21  ;;  %v170_v24 = vpop.f32.mrb[3].mxu1 }

</bundles_post_ra>
